<compile_context>
chip_gen: v7x
topology: tpu7x:2x2x1
jax: 0.10.0
libtpu: 0.0.40
codegen_flags: <defaults>
</compile_context>

<pallas_src>
import functools

import jax
import jax.numpy as jnp
from jax.experimental import pallas as pl
from jax.experimental.pallas import tpu as pltpu

_LANES = 128
_SINGLE_BLOCK_MAX_BYTES = 128 * 1024   # below this: one block (per-call overhead dominates)
_TARGET_TILE_BYTES = 1 << 20           # ~1 MiB tiles sit at the measured HBM-roofline knee
_NUM_SPLITS = 2                        # leading "parallel" axis (v7x has 2 TensorCores)


def _combined_loss_kernel(w_ref, pred_ref, targ_ref, acc_ref, *,
                          blocks_per_split, block_rows, valid_rows,
                          use_fold, needs_mask):
    """Grid (splits, steps): accumulate w0*sum(d^2) + w1*sum(|d|) per lane."""
    i = pl.program_id(0)       # split (parallel across TensorCores on v7x)
    j = pl.program_id(1)       # reduction step within the split (arbitrary)

    @pl.when(j == 0)
    def _init():
        acc_ref[...] = jnp.zeros_like(acc_ref)

    p = pred_ref[...].astype(jnp.float32)
    t = targ_ref[...].astype(jnp.float32)
    d = p - t
    if needs_mask:
        # Row ids of this *logical* block; rows >= valid_rows (ragged tail, or a
        # padded grid step whose DMA was clamped onto the last real block) are zeroed
        # before squaring/abs, so they contribute nothing to either criterion.
        row0 = (i * blocks_per_split + j) * block_rows
        row_ids = jax.lax.broadcasted_iota(jnp.int32, d.shape, 0) + row0
        d = jnp.where(row_ids < valid_rows, d, 0.0)

    sq = d * d                 # criterion 0: MSELoss numerator
    ab = jnp.abs(d)            # criterion 1: L1Loss numerator

    if use_fold:
        # VALU-only fold of the (block_rows, C) tile onto an (8, C) slab so the
        # accumulator read-modify-write touches ~1 vreg per criterion per step.
        g = block_rows // 8
        c = d.shape[1]
        sq = jnp.sum(sq.reshape(g, 8, c), axis=0)
        ab = jnp.sum(ab.reshape(g, 8, c), axis=0)
    else:
        # Small / lane-ragged single-block case: one cheap cross-sublane reduce.
        sq = jnp.sum(sq, axis=0, keepdims=True)
        ab = jnp.sum(ab, axis=0, keepdims=True)

    # Weighted combination of the criteria (the module's weighted sum), kept as
    # per-lane partial sums; the tiny final reduce + 1/N happens in the wrapper.
    acc_ref[...] += (w_ref[0] * sq + w_ref[1] * ab)[None]


def combined_loss(pred, target, weight=None):
    """CombinedLoss([MSELoss(), L1Loss()], weight).forward(pred, target)."""
    assert pred.shape == target.shape
    total = int(pred.size)
    assert total > 0
    if weight is None:
        weight = jnp.ones((2,), jnp.float32)
    w = jnp.asarray(weight, dtype=jnp.float32).reshape(-1)
    assert w.shape == (2,), "this instantiation combines exactly two criteria"

    # ---- 2-D (rows, lanes) view: never pad, never dtype-cast in HBM --------------
    last = pred.shape[-1] if pred.ndim >= 1 else 1
    if pred.ndim >= 2 and last % _LANES == 0:
        ncols = last                   # already lane-dense; just collapse leading dims
    elif total % _LANES == 0:
        ncols = _LANES                 # flat view is lane-dense
    elif pred.ndim >= 2:
        ncols = last                   # ragged count: keep native last dim (full-C blocks)
    else:
        ncols = total
    nrows = total // ncols
    p2 = pred.reshape(nrows, ncols)
    t2 = target.reshape(nrows, ncols)

    # ---- block / grid selection ---------------------------------------------------
    row_bytes = ncols * pred.dtype.itemsize
    if nrows * row_bytes <= _SINGLE_BLOCK_MAX_BYTES or nrows <= 8:
        block_rows = nrows             # single block (== full dim, so any row count is legal)
    else:
        br = min(_TARGET_TILE_BYTES // row_bytes, pl.cdiv(nrows, 4))
        block_rows = max(8, (br // 8) * 8)
    num_blocks = pl.cdiv(nrows, block_rows)
    n_split = _NUM_SPLITS if num_blocks >= _NUM_SPLITS else 1
    bps = pl.cdiv(num_blocks, n_split)          # reduction steps per split
    use_fold = (ncols % _LANES == 0) and (block_rows % 8 == 0)
    acc_rows = 8 if use_fold else 1
    needs_mask = (nrows % block_rows != 0) or (n_split * bps != num_blocks)
    inv_n = 1.0 / float(total)

    if n_split * bps == num_blocks:
        def in_index_map(i, j, w_sref):
            return (i * bps + j, 0)
    else:
        # Padded grid steps of the last split are clamped onto the last real block
        # (keeps the auto-DMA in-bounds); the kernel masks them to zero.
        def in_index_map(i, j, w_sref):
            return (jnp.minimum(i * bps + j, num_blocks - 1), 0)

    kernel = functools.partial(
        _combined_loss_kernel,
        blocks_per_split=bps, block_rows=block_rows, valid_rows=nrows,
        use_fold=use_fold, needs_mask=needs_mask)

    grid_spec = pltpu.PrefetchScalarGridSpec(
        num_scalar_prefetch=1,                  # criterion weights land in SMEM
        grid=(n_split, bps),
        in_specs=[pl.BlockSpec((block_rows, ncols), in_index_map),
                  pl.BlockSpec((block_rows, ncols), in_index_map)],
        # Per-split accumulator slab, resident across the reduction axis.
        out_specs=pl.BlockSpec((1, acc_rows, ncols), lambda i, j, w_sref: (i, 0, 0)),
    )

    partial_sums = pl.pallas_call(
        kernel,
        grid_spec=grid_spec,
        out_shape=jax.ShapeDtypeStruct((n_split, acc_rows, ncols), jnp.float32),
        compiler_params=pltpu.CompilerParams(
            dimension_semantics=("parallel", "arbitrary")),
    )(w, p2, t2)

    # Tiny epilogue: sum of at most (2, 8, 128) partials + the shared mean scale.
    return jnp.sum(partial_sums) * inv_n


def _reference(pred, target, weight):
    d = pred.astype(jnp.float32) - target.astype(jnp.float32)
    w = jnp.asarray(weight, jnp.float32)
    return w[0] * jnp.mean(d * d) + w[1] * jnp.mean(jnp.abs(d))


if __name__ == "__main__":
    key = jax.random.PRNGKey(0)
    weight = jnp.array([0.7, 0.3], dtype=jnp.float32)
    ks = jax.random.split(key, 8)

    # 1) Primary NCHW shape from the module instantiation: (2, 4, 16, 16).
    pred = jax.random.normal(ks[0], (2, 4, 16, 16), dtype=jnp.float32)
    target = jax.random.normal(ks[1], (2, 4, 16, 16), dtype=jnp.float32)
    loss = combined_loss(pred, target, weight)
    jax.block_until_ready(loss)
    ref = _reference(pred, target, weight)
    assert jnp.allclose(loss, ref, rtol=1e-5, atol=1e-6), (loss, ref)

    # 2) Ragged element count (not a multiple of 128): no padding copy, full-width
    #    lane blocks on the native last dim.
    pred_r = jax.random.normal(ks[2], (3, 5, 37, 53), dtype=jnp.float32)
    target_r = jax.random.normal(ks[3], (3, 5, 37, 53), dtype=jnp.float32)
    loss_r = combined_loss(pred_r, target_r, weight)
    jax.block_until_ready(loss_r)
    ref_r = _reference(pred_r, target_r, weight)
    assert jnp.allclose(loss_r, ref_r, rtol=1e-5, atol=1e-6), (loss_r, ref_r)

    # 3) Larger input: tiled reduction, 2-way core split, masked partial + padded
    #    grid steps (5 row-blocks spread over a (2, 3) grid).
    pred_l = jax.random.normal(ks[4], (2, 4, 250, 144), dtype=jnp.float32)
    target_l = jax.random.normal(ks[5], (2, 4, 250, 144), dtype=jnp.float32)
    loss_l = combined_loss(pred_l, target_l, weight)
    jax.block_until_ready(loss_l)
    ref_l = _reference(pred_l, target_l, weight)
    assert jnp.allclose(loss_l, ref_l, rtol=1e-5, atol=1e-5), (loss_l, ref_l)

    # 4) bf16 inputs stay bf16 on the wire; the kernel upcasts on the VPU.
    pred_b = jax.random.normal(ks[6], (2, 4, 16, 16), dtype=jnp.bfloat16)
    target_b = jax.random.normal(ks[7], (2, 4, 16, 16), dtype=jnp.bfloat16)
    loss_b = combined_loss(pred_b, target_b, weight)
    jax.block_until_ready(loss_b)
    ref_b = _reference(pred_b, target_b, weight)
    assert jnp.allclose(loss_b, ref_b, rtol=1e-4, atol=1e-5), (loss_b, ref_b)

    print("KERNEL_OK")
</pallas_src>

<mosaic_0001>
module attributes {stable_mosaic.version = 11 : i64} {
  func.func @_combined_loss_kernel(%arg0: i32, %arg1: i32, %arg2: memref<2xf32, #tpu.memory_space<smem>>, %arg3: memref<16x128xf32, #tpu.memory_space<vmem>>, %arg4: memref<16x128xf32, #tpu.memory_space<vmem>>, %arg5: memref<1x8x128xf32, #tpu.memory_space<vmem>>) attributes {dimension_semantics = [#tpu.dimension_semantics<parallel>, #tpu.dimension_semantics<arbitrary>], iteration_bounds = array<i64: 1, 1>, scalar_prefetch = 1 : i64, scratch_operands = 0 : i64, tpu.core_type = #tpu.core_type<tc>, window_params = [{transform_indices = @transform_0, window_bounds = array<i64: 16, 128>}, {transform_indices = @transform_1, window_bounds = array<i64: 16, 128>}, {transform_indices = @transform_2, window_bounds = array<i64: 1, 8, 128>}]} {
    %c0_i32 = arith.constant 0 : i32
    %0 = arith.cmpi eq, %arg1, %c0_i32 : i32
    %1 = arith.extui %0 : i1 to i32
    %c0_i32_0 = arith.constant 0 : i32
    %2 = arith.cmpi ne, %1, %c0_i32_0 : i32
    scf.if %2 {
      %cst_12 = arith.constant 0.000000e+00 : f32
      %23 = vector.broadcast %cst_12 : f32 to vector<1x8x128xf32>
      %c0_13 = arith.constant 0 : index
      %c0_14 = arith.constant 0 : index
      %c0_15 = arith.constant 0 : index
      %24 = vector.load %arg5[%c0_13, %c0_14, %c0_15] : memref<1x8x128xf32, #tpu.memory_space<vmem>>, vector<1x8x128xf32>
      tpu.vector_store %arg5[%c0_13, %c0_14, %c0_15], %23 {strides = array<i32>} : memref<1x8x128xf32, #tpu.memory_space<vmem>>, vector<1x8x128xf32>,
    } else {
    }
    %c0 = arith.constant 0 : index
    %c0_1 = arith.constant 0 : index
    %3 = vector.load %arg3[%c0, %c0_1] : memref<16x128xf32, #tpu.memory_space<vmem>>, vector<16x128xf32>
    %c0_2 = arith.constant 0 : index
    %c0_3 = arith.constant 0 : index
    %4 = vector.load %arg4[%c0_2, %c0_3] : memref<16x128xf32, #tpu.memory_space<vmem>>, vector<16x128xf32>
    %5 = arith.subf %3, %4 : vector<16x128xf32>
    %6 = arith.mulf %5, %5 : vector<16x128xf32>
    %7 = math.absf %5 : vector<16x128xf32>
    %8 = vector.shape_cast %6 : vector<16x128xf32> to vector<2x8x128xf32>
    %cst = arith.constant dense<0.000000e+00> : vector<8x128xf32>
    %9 = vector.multi_reduction <add>, %8, %cst [0] : vector<2x8x128xf32> to vector<8x128xf32>
    %10 = vector.shape_cast %7 : vector<16x128xf32> to vector<2x8x128xf32>
    %cst_4 = arith.constant dense<0.000000e+00> : vector<8x128xf32>
    %11 = vector.multi_reduction <add>, %10, %cst_4 [0] : vector<2x8x128xf32> to vector<8x128xf32>
    %c0_5 = arith.constant 0 : index
    %c0_6 = arith.constant 0 : index
    %c0_7 = arith.constant 0 : index
    %12 = vector.load %arg5[%c0_5, %c0_6, %c0_7] : memref<1x8x128xf32, #tpu.memory_space<vmem>>, vector<1x8x128xf32>
    %c0_8 = arith.constant 0 : index
    %13 = memref.load %arg2[%c0_8] : memref<2xf32, #tpu.memory_space<smem>>
    %14 = vector.broadcast %13 : f32 to vector<8x128xf32>
    %15 = arith.mulf %14, %9 : vector<8x128xf32>
    %c1 = arith.constant 1 : index
    %16 = memref.load %arg2[%c1] : memref<2xf32, #tpu.memory_space<smem>>
    %17 = vector.broadcast %16 : f32 to vector<8x128xf32>
    %18 = arith.mulf %17, %11 : vector<8x128xf32>
    %19 = arith.addf %15, %18 : vector<8x128xf32>
    %20 = vector.shape_cast %19 : vector<8x128xf32> to vector<1x8x128xf32>
    %21 = arith.addf %12, %20 : vector<1x8x128xf32>
    %c0_9 = arith.constant 0 : index
    %c0_10 = arith.constant 0 : index
    %c0_11 = arith.constant 0 : index
    %22 = vector.load %arg5[%c0_9, %c0_10, %c0_11] : memref<1x8x128xf32, #tpu.memory_space<vmem>>, vector<1x8x128xf32>
    tpu.vector_store %arg5[%c0_9, %c0_10, %c0_11], %21 {strides = array<i32>} : memref<1x8x128xf32, #tpu.memory_space<vmem>>, vector<1x8x128xf32>,
    return
  }
  func.func @transform_0(%arg0: i32, %arg1: i32, %arg2: memref<2xf32, #tpu.memory_space<smem>>) -> (i32, i32) {
    %c1_i32 = arith.constant 1 : i32
    %0 = arith.muli %arg0, %c1_i32 : i32
    %1 = arith.addi %0, %arg1 : i32
    %c0_i32 = arith.constant 0 : i32
    %c0_i32_0 = arith.constant 0 : i32
    return %1, %c0_i32 : i32, i32
  }
  func.func @transform_1(%arg0: i32, %arg1: i32, %arg2: memref<2xf32, #tpu.memory_space<smem>>) -> (i32, i32) {
    %c1_i32 = arith.constant 1 : i32
    %0 = arith.muli %arg0, %c1_i32 : i32
    %1 = arith.addi %0, %arg1 : i32
    %c0_i32 = arith.constant 0 : i32
    %c0_i32_0 = arith.constant 0 : i32
    return %1, %c0_i32 : i32, i32
  }
  func.func @transform_2(%arg0: i32, %arg1: i32, %arg2: memref<2xf32, #tpu.memory_space<smem>>) -> (i32, i32, i32) {
    %c0_i32 = arith.constant 0 : i32
    %c0_i32_0 = arith.constant 0 : i32
    %c0_i32_1 = arith.constant 0 : i32
    return %arg0, %c0_i32, %c0_i32_0 : i32, i32, i32
  }
}

</mosaic_0001>

<bundles_post_ra>
// kernel: tpu_custom_call.1
= control target key start
LH: loop header
LB: loop body
LE: loop exit
PB: predicated region body
PF: predicated region fallthrough
CT: control target
= control target key end

     0   :  { %s266_s0 = inlined_call_operand.hbm [shape: f32[2], index: 0, kind: input, shape index: {}]   ;;  %s267_s1 = inlined_call_operand.hbm [shape: f32[16,128], index: 1, kind: input, shape index: {}]   ;;  %s268_s2 = inlined_call_operand.hbm [shape: f32[16,128], index: 2, kind: input, shape index: {}]   ;;  %s269_s3 = inlined_call_operand.hbm [shape: f32[1,8,128], index: 3, kind: output, shape index: {}]  }
   0x1   :  { %s108_s14 = scalar_lea.hbm %s266_s0, 16 }
   0x2   :  { %p109_p0 = scmp.ne.s32.totalorder %s266_s0, %s108_s14  ;;  %p112_p1 = scmp.lt.u32.totalorder %s108_s14, %s266_s0 }
   0x4   :  { %p114_p2 = pnand %p112_p1, %p109_p0 }
   0x6   :  { %117 = shalt.err (!%p114_p2)  }
   0x7   :  { %s192_s19 = smov [#allocation3]  }
   0x8   :  { %9 = dma.hbm_to_smem %s266_s0, 16, %s192_s19, [#allocation2] }
   0x9   :  { %184 = dma.done.wait [#allocation2], 16 }
   0xa   :  { %185 = vsyncadd [#allocation2], 4294967280 }
   0xb   :  { %11 = sfence }
   0xc   :  { %12 = vsyncpa [#allocation5], 0 }
   0xd   :  { %13 = vsyncpa [#allocation8], 0 }
   0xe   :  { %14 = vsyncpa [#allocation6], 0  ;;  %s193_s22 = smov [#allocation4]   ;;  %s118_s26 = scalar_lea.hbm %s267_s1, 256 }
   0xf   :  { %s24_s23 = sshll.u32 %s193_s22, 4  ;;  %p119_p3 = scmp.ne.s32.totalorder %s267_s1, %s118_s26  ;;  %s25_s23 = int_to_ptr.vmem [resolvable:$true] %s24_s23 }
  0x10   :  { %p122_p4 = scmp.lt.u32.totalorder %s118_s26, %s267_s1 }
  0x12   :  { %p124_p5 = pnand %p122_p4, %p119_p3 }
  0x14   :  { %127 = shalt.err (!%p124_p5)
}
  0x15   :  { %s128_s0 = scalar_lea.vmem %s25_s23, 256  ;;  %p133_p7 = scmp.lt.s32.totalorder %s25_s23, %s25_s23 }
  0x16   :  { %p129_p6 = scmp.ne.s32.totalorder %s25_s23, %s128_s0  ;;  %p134_p8 = scmp.lt.s32.totalorder %s128_s0, %s128_s0 }
  0x18   :  { %p135_p9 = por %p134_p8, %p133_p7 }
  0x1a   :  { %p136_p10 = pnand %p135_p9, %p129_p6 }
  0x1c   :  { %139 = shalt.err (!%p136_p10)
}
  0x1d   :  { %s194_s4 = smov 128   ;;  %s195_s5 = smov 8  }
  0x1e   :  { %30 = dma.hbm_to_vmem [thread:$0]  %s267_s1, 256, %s25_s23, [#allocation5], %s194_s4, %s194_s4, %s195_s5  }
  0x1f   :  { %s196_s8 = smov [#allocation7]   ;;  %s140_s12 = scalar_lea.hbm %s268_s2, 256 }
  0x20   :  { %s40_s9 = sshll.u32 %s196_s8, 4  ;;  %p141_p11 = scmp.ne.s32.totalorder %s268_s2, %s140_s12  ;;  %s41_s9 = int_to_ptr.vmem [resolvable:$true] %s40_s9 }
  0x21   :  { %p144_p12 = scmp.lt.u32.totalorder %s140_s12, %s268_s2 }
  0x23   :  { %p146_p13 = pnand %p144_p12, %p141_p11 }
  0x25   :  { %149 = shalt.err (!%p146_p13)
}
  0x26   :  { %s150_s17 = scalar_lea.vmem %s41_s9, 256  ;;  %p155_p1 = scmp.lt.s32.totalorder %s41_s9, %s41_s9 }
  0x27   :  { %p151_p0 = scmp.ne.s32.totalorder %s41_s9, %s150_s17  ;;  %p156_p2 = scmp.lt.s32.totalorder %s150_s17, %s150_s17 }
  0x29   :  { %p157_p3 = por %p156_p2, %p155_p1 }
  0x2b   :  { %p158_p4 = pnand %p157_p3, %p151_p0 }
  0x2d   :  { %161 = shalt.err (!%p158_p4)
}
  0x2e   :  { %46 = dma.hbm_to_vmem [thread:$0]  %s268_s2, 256, %s41_s9, [#allocation8], %s194_s4, %s194_s4, %s195_s5  }
  0x2f   :  { %186 = dma.done.wait [#allocation5], 256  }
  0x30   :  { %187 = vsyncadd [#allocation5], 4294967040 }
  0x31   :  { %188 = dma.done.wait [#allocation8], 256  }
  0x32   :  { %189 = vsyncadd [#allocation8], 4294967040  ;;  %s75_s19 = sld [smem:[#allocation3]]  ;;  %s100_s20 = sld [smem:[#allocation3 + $0x1]]  ;;  %v62_v0 = vld [vmem:[#allocation4] sm:$0xff]  ;;  %v63_v1 = vld [vmem:[#allocation4 + $0x8] sm:$0xff] }
  0x33   :  { %v64_v2 = vld [vmem:[#allocation7] sm:$0xff]  ;;  %v65_v3 = vld [vmem:[#allocation7 + $0x8] sm:$0xff]  ;;  %s197_s2 = smov [#allocation9]  }
  0x34   :  { %v66_v4 = vsub.f32 %v62_v0, %v64_v2  ;;  %v67_v5 = vsub.f32 %v63_v1, %v65_v3  ;;  %s90_s21 = sshll.u32 %s197_s2, 4  ;;  %s91_s21 = int_to_ptr.vmem [resolvable:$true] %s90_s21 }
  0x35   :  { %s162_s22 = scalar_lea.vmem %s91_s21, 128  ;;  %p167_p6 = scmp.lt.s32.totalorder %s91_s21, %s91_s21 }
  0x36   :  { %v68_v6 = vmul.f32 %v66_v4, %v66_v4  ;;  %v70_v7 = vand.u32 2147483647, %v66_v4  ;;  %v69_v8 = vmul.f32 %v67_v5, %v67_v5  ;;  %v71_v9 = vand.u32 2147483647, %v67_v5  ;;  %p163_p5 = scmp.ne.s32.totalorder %s91_s21, %s162_s22  ;;  %p168_p7 = scmp.lt.s32.totalorder %s162_s22, %s162_s22 }
  0x38   :  { %v76_v10 = vstv %s75_s19  ;;  %v79_v11 = vstv %s100_s20  ;;  %v72_v12 = vadd.f32 %v69_v8, %v68_v6  ;;  %v73_v13 = vadd.f32 %v71_v9, %v70_v7  ;;  %p169_p8 = por %p168_p7, %p167_p6 }
  0x3a   :  { %v77_v14 = vmul.f32 %v76_v10, %v72_v12  ;;  %v80_v15 = vmul.f32 %v79_v11, %v73_v13  ;;  %p170_p9 = pnand %p169_p8, %p163_p5 }
  0x3c   :  { %v81_v16 = vadd.f32 %v80_v15, %v77_v14 }
  0x3e   :  { %83 = vst [vmem:[#allocation9] sm:$0xff] %v81_v16 }
  0x3f   :  { %173 = shalt.err (!%p170_p9)
}
  0x40   :  { %s174_s25 = scalar_lea.hbm %s269_s3, 128 }
  0x41   :  { %p175_p10 = scmp.ne.s32.totalorder %s269_s3, %s174_s25  ;;  %p178_p11 = scmp.lt.u32.totalorder %s174_s25, %s269_s3 }
  0x43   :  { %p180_p12 = pnand %p178_p11, %p175_p10 }
  0x45   :  { %183 = shalt.err (!%p180_p12)
}
  0x46   :  { %93 = dma.vmem_to_hbm [thread:$0]  %s91_s21, 128, %s269_s3, [#allocation6]  }
  0x47   :  { %190 = dma.done.wait [#allocation6], 128  }
  0x48   :  { %191 = vsyncadd [#allocation6], 4294967168 }
  0x49   :  { %97 = vsyncpa [#allocation5], 1 }
  0x4a   :  { %98 = vsyncpa [#allocation8], 1 }
  0x4b   :  { %99 = vsyncpa [#allocation6], 1 }

</bundles_post_ra>
